<compile_context>
chip_gen: v7x
topology: tpu7x:2x2x1
jax: 0.10.0
libtpu: 0.0.40
codegen_flags: <defaults>
</compile_context>

<pallas_src>
import jax
import jax.numpy as jnp
from jax.experimental import pallas as pl
from jax.experimental.pallas import tpu as pltpu


def mlp_kernel(x_ref, w1_ref, b1_ref, w2_ref, b2_ref, o_ref):
    # fc1 + sigmoid (MXU matmul, f32 accumulate)
    h = jnp.dot(x_ref[...], w1_ref[...], preferred_element_type=jnp.float32)
    h = jax.nn.sigmoid(h + b1_ref[...])
    # fc2 + sigmoid (keep h in f32; do not downcast before the second matmul)
    o = jnp.dot(h, w2_ref[...], preferred_element_type=jnp.float32)
    o = jax.nn.sigmoid(o + b2_ref[...])
    o_ref[...] = o.astype(o_ref.dtype)


def mlp_forward(x, w1, b1, w2, b2, *, block_b=None):
    """x: (B, in_dim); w1: (in_dim, hidden); b1: (1, hidden);
    w2: (hidden, out_dim); b2: (1, out_dim).  Weights pre-transposed (in, out).
    All arrays are used at their natural (narrow) shapes — no lane padding."""
    B, in_dim = x.shape
    hidden = w1.shape[1]
    out_dim = w2.shape[1]
    dtype = x.dtype

    if block_b is None:
        # >= 2 grid steps so v7x's two TensorCores both get work; cap the tile
        # so very large batches still amortize the ~0.35us per-step overhead.
        block_b = min(1024, max(8, pl.cdiv(B, 2)))
    block_b = pl.cdiv(block_b, 8) * 8          # sublane alignment
    Bp = pl.cdiv(B, block_b) * block_b

    # Only pad batch rows, and only if needed (no-op for the demo shapes).
    xp = x if Bp == B else jnp.zeros((Bp, in_dim), dtype).at[:B].set(x)

    out = pl.pallas_call(
        mlp_kernel,
        out_shape=jax.ShapeDtypeStruct((Bp, out_dim), dtype),
        grid=(Bp // block_b,),
        in_specs=[
            # x: tiled over the batch grid axis; last dim = full array dim (5)
            pl.BlockSpec((block_b, in_dim), lambda i: (i, 0)),
            # weights / biases: full-array blocks, resident across all steps
            # (constant index_map -> single DMA; footprint is a few KiB, so the
            #  default double-buffering is harmless).
            pl.BlockSpec((in_dim, hidden), lambda i: (0, 0)),
            pl.BlockSpec((1, hidden), lambda i: (0, 0)),
            pl.BlockSpec((hidden, out_dim), lambda i: (0, 0)),
            pl.BlockSpec((1, out_dim), lambda i: (0, 0)),
        ],
        out_specs=pl.BlockSpec((block_b, out_dim), lambda i: (i, 0)),
        compiler_params=pltpu.CompilerParams(
            dimension_semantics=("parallel",),
        ),
    )(xp, w1, b1, w2, b2)

    return out if Bp == B else out[:B]


def init_params(key, in_dim=5, hidden=10, out_dim=5, dtype=jnp.float32):
    # Deterministic init mimicking torch.nn.Linear (uniform +/- 1/sqrt(fan_in)).
    k1, k2, k3, k4 = jax.random.split(key, 4)
    bound1 = 1.0 / jnp.sqrt(in_dim)
    bound2 = 1.0 / jnp.sqrt(hidden)
    # Stored already transposed: (in, out)
    w1 = jax.random.uniform(k1, (in_dim, hidden), dtype, -bound1, bound1)
    b1 = jax.random.uniform(k2, (1, hidden), dtype, -bound1, bound1)
    w2 = jax.random.uniform(k3, (hidden, out_dim), dtype, -bound2, bound2)
    b2 = jax.random.uniform(k4, (1, out_dim), dtype, -bound2, bound2)
    return w1, b1, w2, b2


if __name__ == "__main__":
    key = jax.random.PRNGKey(0)
    kx, kp = jax.random.split(key)

    # Module implies (B, 5) inputs; B=256 gives 2 grid steps of 128 rows each
    # (exercises pipelining and both v7x TensorCores) with zero wrapper-side
    # padding or slicing.
    B = 256
    x = jax.random.normal(kx, (B, 5), jnp.float32)
    w1, b1, w2, b2 = init_params(kp)

    out = mlp_forward(x, w1, b1, w2, b2)
    jax.block_until_ready(out)

    # Reference check (pure JAX) for semantics parity with the PyTorch module.
    ref = jax.nn.sigmoid(jax.nn.sigmoid(x @ w1 + b1) @ w2 + b2)
    assert out.shape == (B, 5)
    assert jnp.allclose(out, ref, atol=1e-5), "mismatch vs reference"
    print("KERNEL_OK")
</pallas_src>

<mosaic_0001>
module attributes {stable_mosaic.version = 11 : i64} {
  func.func @mlp_kernel(%arg0: i32, %arg1: memref<128x5xf32, #tpu.memory_space<vmem>>, %arg2: memref<5x10xf32, #tpu.memory_space<vmem>>, %arg3: memref<1x10xf32, #tpu.memory_space<vmem>>, %arg4: memref<10x5xf32, #tpu.memory_space<vmem>>, %arg5: memref<1x5xf32, #tpu.memory_space<vmem>>, %arg6: memref<128x5xf32, #tpu.memory_space<vmem>>) attributes {dimension_semantics = [#tpu.dimension_semantics<parallel>], iteration_bounds = array<i64: 2>, scalar_prefetch = 0 : i64, scratch_operands = 0 : i64, tpu.core_type = #tpu.core_type<tc>, window_params = [{transform_indices = @transform_0, window_bounds = array<i64: 128, 5>}, {pipeline_mode = #tpu.pipeline_mode<synchronous>, transform_indices = @transform_1, window_bounds = array<i64: 5, 10>}, {pipeline_mode = #tpu.pipeline_mode<synchronous>, transform_indices = @transform_2, window_bounds = array<i64: 1, 10>}, {pipeline_mode = #tpu.pipeline_mode<synchronous>, transform_indices = @transform_3, window_bounds = array<i64: 10, 5>}, {pipeline_mode = #tpu.pipeline_mode<synchronous>, transform_indices = @transform_4, window_bounds = array<i64: 1, 5>}, {transform_indices = @transform_5, window_bounds = array<i64: 128, 5>}]} {
    %c0 = arith.constant 0 : index
    %c0_0 = arith.constant 0 : index
    %0 = vector.load %arg1[%c0, %c0_0] : memref<128x5xf32, #tpu.memory_space<vmem>>, vector<128x5xf32>
    %c0_1 = arith.constant 0 : index
    %c0_2 = arith.constant 0 : index
    %1 = vector.load %arg2[%c0_1, %c0_2] : memref<5x10xf32, #tpu.memory_space<vmem>>, vector<5x10xf32>
    %cst = arith.constant dense<0.000000e+00> : vector<128x10xf32>
    %2 = tpu.matmul %0, %1, %cst {dimension_numbers = #tpu.dot_dimension_numbers<[1], [0], [0], [1], [0, 0, 1, 1], [], []>} : vector<128x5xf32>, vector<5x10xf32>, vector<128x10xf32> -> vector<128x10xf32>
    %c0_3 = arith.constant 0 : index
    %c0_4 = arith.constant 0 : index
    %3 = vector.load %arg3[%c0_3, %c0_4] : memref<1x10xf32, #tpu.memory_space<vmem>>, vector<1x10xf32>
    %4 = vector.broadcast %3 : vector<1x10xf32> to vector<128x10xf32>
    %5 = arith.addf %2, %4 : vector<128x10xf32>
    %6 = arith.negf %5 : vector<128x10xf32>
    %7 = math.exp %6 : vector<128x10xf32>
    %cst_5 = arith.constant 1.000000e+00 : f32
    %8 = vector.broadcast %cst_5 : f32 to vector<128x10xf32>
    %9 = arith.addf %8, %7 : vector<128x10xf32>
    %10 = arith.divf %8, %9 : vector<128x10xf32>
    %c0_6 = arith.constant 0 : index
    %c0_7 = arith.constant 0 : index
    %11 = vector.load %arg4[%c0_6, %c0_7] : memref<10x5xf32, #tpu.memory_space<vmem>>, vector<10x5xf32>
    %cst_8 = arith.constant dense<0.000000e+00> : vector<128x5xf32>
    %12 = tpu.matmul %10, %11, %cst_8 {dimension_numbers = #tpu.dot_dimension_numbers<[1], [0], [0], [1], [0, 0, 1, 1], [], []>} : vector<128x10xf32>, vector<10x5xf32>, vector<128x5xf32> -> vector<128x5xf32>
    %c0_9 = arith.constant 0 : index
    %c0_10 = arith.constant 0 : index
    %13 = vector.load %arg5[%c0_9, %c0_10] : memref<1x5xf32, #tpu.memory_space<vmem>>, vector<1x5xf32>
    %14 = vector.broadcast %13 : vector<1x5xf32> to vector<128x5xf32>
    %15 = arith.addf %12, %14 : vector<128x5xf32>
    %16 = arith.negf %15 : vector<128x5xf32>
    %17 = math.exp %16 : vector<128x5xf32>
    %cst_11 = arith.constant 1.000000e+00 : f32
    %18 = vector.broadcast %cst_11 : f32 to vector<128x5xf32>
    %19 = arith.addf %18, %17 : vector<128x5xf32>
    %20 = arith.divf %18, %19 : vector<128x5xf32>
    %c0_12 = arith.constant 0 : index
    %c0_13 = arith.constant 0 : index
    %21 = vector.load %arg6[%c0_12, %c0_13] : memref<128x5xf32, #tpu.memory_space<vmem>>, vector<128x5xf32>
    tpu.vector_store %arg6[%c0_12, %c0_13], %20 {strides = array<i32>} : memref<128x5xf32, #tpu.memory_space<vmem>>, vector<128x5xf32>,
    return
  }
  func.func @transform_0(%arg0: i32) -> (i32, i32) {
    %c0_i32 = arith.constant 0 : i32
    %c0_i32_0 = arith.constant 0 : i32
    return %arg0, %c0_i32 : i32, i32
  }
  func.func @transform_1(%arg0: i32) -> (i32, i32) {
    %c0_i32 = arith.constant 0 : i32
    %c0_i32_0 = arith.constant 0 : i32
    %c0_i32_1 = arith.constant 0 : i32
    return %c0_i32, %c0_i32_0 : i32, i32
  }
  func.func @transform_2(%arg0: i32) -> (i32, i32) {
    %c0_i32 = arith.constant 0 : i32
    %c0_i32_0 = arith.constant 0 : i32
    %c0_i32_1 = arith.constant 0 : i32
    return %c0_i32, %c0_i32_0 : i32, i32
  }
  func.func @transform_3(%arg0: i32) -> (i32, i32) {
    %c0_i32 = arith.constant 0 : i32
    %c0_i32_0 = arith.constant 0 : i32
    %c0_i32_1 = arith.constant 0 : i32
    return %c0_i32, %c0_i32_0 : i32, i32
  }
  func.func @transform_4(%arg0: i32) -> (i32, i32) {
    %c0_i32 = arith.constant 0 : i32
    %c0_i32_0 = arith.constant 0 : i32
    %c0_i32_1 = arith.constant 0 : i32
    return %c0_i32, %c0_i32_0 : i32, i32
  }
  func.func @transform_5(%arg0: i32) -> (i32, i32) {
    %c0_i32 = arith.constant 0 : i32
    %c0_i32_0 = arith.constant 0 : i32
    return %arg0, %c0_i32 : i32, i32
  }
}

</mosaic_0001>

<bundles_post_ra>
// kernel: tpu_custom_call.1
= control target key start
LH: loop header
LB: loop body
LE: loop exit
PB: predicated region body
PF: predicated region fallthrough
CT: control target
= control target key end

     0   :  { %s1271_s18 = smov 0   ;;  %s1430_s0 = inlined_call_operand.vmem [shape: f32[256,5], index: 0, kind: input, shape index: {}]   ;;  %s1431_s1 = inlined_call_operand.vmem [shape: f32[5,10], index: 1, kind: input, shape index: {}]   ;;  %s1432_s2 = inlined_call_operand.vmem [shape: f32[1,10], index: 2, kind: input, shape index: {}]   ;;  %s1433_s3 = inlined_call_operand.vmem [shape: f32[10,5], index: 3, kind: input, shape index: {}]   ;;  %s1434_s4 = inlined_call_operand.vmem [shape: f32[1,5], index: 4, kind: input, shape index: {}]   ;;  %s1435_s5 = inlined_call_operand.vmem [shape: f32[256,5], index: 5, kind: output, shape index: {}]  }
   0x1 LB: > { %s921_s19 = sadd.s32 4294967295, %s1238_s18   ;;  %p925_p0 = scmp.ge.s32.totalorder %s1238_s18, 1  ;;  %s1238_s18 = sphi %s1271_s18, %s15_s18  }
   0x2   : > { %p188_p1 = scmp.lt.s32.totalorder %s1238_s18, 3 }
   0x4   : > { %p189_p2 = pnand %p925_p0, %p188_p1 }
   0x5   : > { %v244_v0 = vld [vmem:[%s1431_s1] sm:$0x1f] (!%p189_p2)  ;;  %vm301_vm0 = vcmask (!%p189_p2), 1044480   ;;  %s926_s22 = sshll.u32 (!%p189_p2), %s921_s19, 4  ;;  %vm252_vm1 = vcmask (!%p189_p2), 39936   ;;  %vm604_vm2 = vcmask (!%p189_p2), 1041408  }
   0x6   : > { %192 = sbr.rel (%p189_p2) target bundleno = 532 (0x214), region = 40  ;;  %1035 = vmatprep.subr.msk.mxu0 (!%p189_p2), %vm301_vm0, %v244_v0  ;;  %p217_p3 = scmp.lt.s32.totalorder (!%p189_p2), %s926_s22, 31  ;;  %v546_v17 = vld [vmem:[%s1433_s3] sm:$0xff] (!%p189_p2)  ;;  %v547_v18 = vld [vmem:[%s1433_s3 + $0x8] sm:$0x3] (!%p189_p2)  ;;  %vm1240_vm3 = vmmov (!%p189_p2), 1  }
   0x7   : > { %1036 = vmatpush3.msk.msra.mxu0 (!%p189_p2), %vm301_vm0, %v244_v0  ;;  %v1089_v19 = vpack.c.bf16 (!%p189_p2), %v547_v18, %v546_v17  ;;  %vm1090_vm4 = vmpackc.low (!%p189_p2), %vm604_vm2, %vm1240_vm3  ;;  %v1333_v20 = vld [vmem:[%s1432_s2] ss:$0 sm:$0xff] (!%p189_p2)  ;;  %vm555_vm5 = vcmask (!%p189_p2), 80896  }
   0x9   : > { %1091 = vmatprep.subr.msk.bf16.mxu1 (!%p189_p2), %vm1090_vm4, %v1089_v19 }
   0xa   : > { %1094 = vmatpush3.bf16.msk.msra.mxu1 (!%p189_p2), %vm1090_vm4, %v1089_v19 }
   0xd   : > { %s1437_s22 = smov (!%p217_p3, %s926_s22), 31 }
   0xe   : > { %s927_s23 = sshll.u32 %s1437_s22, 3 }
   0xf   : > { %s1290_s26 = scalar_lea.vmem %s1430_s0, %s927_s23  ;;  %s1389_s12 = scalar_lea.vmem %s1435_s5, %s927_s23 }
  0x10   : > { %v228_v1 = vld [vmem:[%s1290_s26] sm:$0xff]  ;;  %v229_v2 = vld [vmem:[%s1290_s26 + $0x8] sm:$0xff]  ;;  %v230_v3 = vld [vmem:[%s1290_s26 + $0x10] sm:$0xff] }
  0x11   : > { %1037 = vmatprep.mubr.msk.f32.mxu0 %vm252_vm1, %v228_v1  ;;  %v231_v4 = vld [vmem:[%s1290_s26 + $0x18] sm:$0xff]  ;;  %v232_v5 = vld [vmem:[%s1290_s26 + $0x20] sm:$0xff]  ;;  %v233_v6 = vld [vmem:[%s1290_s26 + $0x28] sm:$0xff] }
  0x12   : > { %1038 = vmatmul.mubr.msk.f32.vlgmr.msra.gmra.mrb[0].mxu0 %vm252_vm1, %v229_v2  ;;  %v234_v7 = vld [vmem:[%s1290_s26 + $0x30] sm:$0xff]  ;;  %v235_v8 = vld [vmem:[%s1290_s26 + $0x38] sm:$0xff]  ;;  %v236_v9 = vld [vmem:[%s1290_s26 + $0x40] sm:$0xff] }
  0x13   : > { %1040 = vmatprep.mubr.msk.f32.mxu0 %vm252_vm1, %v230_v3  ;;  %v237_v10 = vld [vmem:[%s1290_s26 + $0x48] sm:$0xff]  ;;  %v238_v11 = vld [vmem:[%s1290_s26 + $0x50] sm:$0xff]  ;;  %v239_v12 = vld [vmem:[%s1290_s26 + $0x58] sm:$0xff] }
  0x14   : > { %v240_v13 = vld [vmem:[%s1290_s26 + $0x60] sm:$0xff]  ;;  %v241_v14 = vld [vmem:[%s1290_s26 + $0x68] sm:$0xff]  ;;  %v242_v15 = vld [vmem:[%s1290_s26 + $0x70] sm:$0xff] }
  0x15   : > { %v243_v16 = vld [vmem:[%s1290_s26 + $0x78] sm:$0xff] }
  0x16   : > { %1041 = vmatmul.mubr.msk.f32.gmra.mrb[2].mxu0 %vm252_vm1, %v231_v4 }
  0x17   : > { %1043 = vmatprep.mubr.msk.f32.mxu0 %vm252_vm1, %v232_v5 }
  0x1a   : > { %1044 = vmatmul.mubr.msk.f32.gmra.mrb[4].mxu0 %vm252_vm1, %v233_v6 }
  0x1b   : > { %1046 = vmatprep.mubr.msk.f32.mxu0 %vm252_vm1, %v234_v7 }
  0x1e   : > { %1047 = vmatmul.mubr.msk.f32.gmra.mrb[6].mxu0 %vm252_vm1, %v235_v8 }
  0x1f   : > { %1049 = vmatprep.mubr.msk.f32.mxu0 %vm252_vm1, %v236_v9 }
  0x22   : > { %1050 = vmatmul.mubr.msk.f32.gmra.mrb[8].mxu0 %vm252_vm1, %v237_v10 }
  0x23   : > { %1052 = vmatprep.mubr.msk.f32.mxu0 %vm252_vm1, %v238_v11 }
  0x26   : > { %1053 = vmatmul.mubr.msk.f32.gmra.mrb[10].mxu0 %vm252_vm1, %v239_v12 }
  0x27   : > { %1055 = vmatprep.mubr.msk.f32.mxu0 %vm252_vm1, %v240_v13 }
  0x2a   : > { %1056 = vmatmul.mubr.msk.f32.gmra.mrb[12].mxu0 %vm252_vm1, %v241_v14 }
  0x2b   : > { %1058 = vmatprep.mubr.msk.f32.mxu0 %vm252_vm1, %v242_v15 }
  0x2e   : > { %1059 = vmatmul.mubr.msk.f32.gmra.mrb[14].mxu0 %vm252_vm1, %v243_v16 }
  0xe5   : > { %v1039_v21 = vpop.f32.mrb[0].mxu0 }
  0xe6   : > { %v377_v22 = vadd.f32 %v1039_v21, %v1333_v20  ;;  %v371_v23 = vpop.f32.mrb[1].mxu0 }
  0xe7   : > { %v372_v24 = vadd.f32 %v1333_v20, %v371_v23 }
  0xe8   : > { %v949_v25 = vmul.f32 -1.442695, %v377_v22 }
  0xe9   : > { %v948_v26 = vmul.f32 -1.442695, %v372_v24  ;;  %v1042_v27 = vpop.f32.mrb[2].mxu0 }
  0xea   : > { %1104 = vpow2.f32 %v949_v25  ;;  %v387_v28 = vadd.f32 %v1042_v27, %v1333_v20  ;;  %v381_v29 = vpop.f32.mrb[3].mxu0 }
  0xeb   : > { %1106 = vpow2.f32 %v948_v26  ;;  %v382_v30 = vadd.f32 %v1333_v20, %v381_v29 }
  0xec   : > { %v951_v31 = vmul.f32 -1.442695, %v387_v28 }
  0xed   : > { %v950_v32 = vmul.f32 -1.442695, %v382_v30  ;;  %v1045_v33 = vpop.f32.mrb[4].mxu0 }
  0xee   : > { %1108 = vpow2.f32 %v951_v31  ;;  %v397_v34 = vadd.f32 %v1045_v33, %v1333_v20  ;;  %v391_v35 = vpop.f32.mrb[5].mxu0 }
  0xef   : > { %1110 = vpow2.f32 %v950_v32  ;;  %v392_v36 = vadd.f32 %v1333_v20, %v391_v35 }
  0xf0   : > { %v953_v37 = vmul.f32 -1.442695, %v397_v34 }
  0xf1   : > { %v952_v38 = vmul.f32 -1.442695, %v392_v36  ;;  %v1048_v39 = vpop.f32.mrb[6].mxu0 }
  0xf2   : > { %1112 = vpow2.f32 %v953_v37  ;;  %v407_v40 = vadd.f32 %v1048_v39, %v1333_v20  ;;  %v401_v41 = vpop.f32.mrb[7].mxu0 }
  0xf3   : > { %1114 = vpow2.f32 %v952_v38  ;;  %v402_v42 = vadd.f32 %v1333_v20, %v401_v41 }
  0xf4   : > { %v1105_v43 = vpop.eup %1104  ;;  %v955_v44 = vmul.f32 -1.442695, %v407_v40 }
  0xf5   : > { %v1107_v45 = vpop.eup %1106  ;;  %v499_v46 = vadd.f32 1.0, %v1105_v43  ;;  %v954_v47 = vmul.f32 -1.442695, %v402_v42  ;;  %v1051_v48 = vpop.f32.mrb[8].mxu0 }
  0xf6   : > { %v498_v49 = vadd.f32 1.0, %v1107_v45  ;;  %1116 = vpow2.f32 %v955_v44  ;;  %v417_v50 = vadd.f32 %v1051_v48, %v1333_v20  ;;  %v411_v51 = vpop.f32.mrb[9].mxu0 }
  0xf7   : > { %1118 = vrcp.f32 %v499_v46  ;;  %v412_v52 = vadd.f32 %v1333_v20, %v411_v51 }
  0xf8   : > { %v1109_v53 = vpop.eup %1108  ;;  %1120 = vrcp.f32 %v498_v49  ;;  %v957_v54 = vmul.f32 -1.442695, %v417_v50 }
  0xf9   : > { %v1111_v55 = vpop.eup %1110  ;;  %v501_v56 = vadd.f32 1.0, %v1109_v53  ;;  %1122 = vpow2.f32 %v954_v47  ;;  %v956_v57 = vmul.f32 -1.442695, %v412_v52  ;;  %v1054_v58 = vpop.f32.mrb[10].mxu0  ;;  %v1370_v53 = vld [vmem:[%s1434_s4] ss:$0 sm:$0xff] }
  0xfa   : > { %v500_v59 = vadd.f32 1.0, %v1111_v55  ;;  %1124 = vpow2.f32 %v957_v54  ;;  %v427_v60 = vadd.f32 %v1054_v58, %v1333_v20  ;;  %v421_v61 = vpop.f32.mrb[11].mxu0 }
  0xfb   : > { %1126 = vrcp.f32 %v501_v56  ;;  %v422_v62 = vadd.f32 %v1333_v20, %v421_v61 }
  0xfc   : > { %v1113_v63 = vpop.eup %1112  ;;  %1128 = vrcp.f32 %v500_v59  ;;  %v959_v0 = vmul.f32 -1.442695, %v427_v60 }
  0xfd   : > { %v1115_v1 = vpop.eup %1114  ;;  %v503_v2 = vadd.f32 1.0, %v1113_v63  ;;  %1130 = vpow2.f32 %v956_v57  ;;  %v958_v3 = vmul.f32 -1.442695, %v422_v62  ;;  %v1057_v4 = vpop.f32.mrb[12].mxu0 }
  0xfe   : > { %v502_v5 = vadd.f32 1.0, %v1115_v1  ;;  %1132 = vpow2.f32 %v959_v0  ;;  %v437_v6 = vadd.f32 %v1057_v4, %v1333_v20  ;;  %v431_v7 = vpop.f32.mrb[13].mxu0 }
  0xff   : > { %1134 = vrcp.f32 %v503_v2  ;;  %v432_v8 = vadd.f32 %v1333_v20, %v431_v7 }
 0x100   : > { %v1117_v9 = vpop.eup %1116  ;;  %1136 = vrcp.f32 %v502_v5  ;;  %v961_v10 = vmul.f32 -1.442695, %v437_v6 }
 0x101   : > { %v1119_v11 = vpop.eup %1118  ;;  %1138 = vpow2.f32 %v958_v3  ;;  %v960_v12 = vmul.f32 -1.442695, %v432_v8  ;;  %v1060_v13 = vpop.f32.mrb[14].mxu0  ;;  %v505_v18 = vadd.f32 1.0, %v1117_v9 }
 0x102   : > { %v1121_v14 = vpop.eup %1120  ;;  %1140 = vpow2.f32 %v961_v10  ;;  %v447_v15 = vadd.f32 %v1060_v13, %v1333_v20  ;;  %v441_v16 = vpop.f32.mrb[15].mxu0 }
 0x103   : > { %v1123_v17 = vpop.eup %1122  ;;  %v442_v19 = vadd.f32 %v1333_v20, %v441_v16  ;;  %1065 = vmatprep.mubr.msk.f32.mxu1 %vm555_vm5, %v1121_v14  ;;  %1142 = vpow2.f32 %v960_v12 }
 0x104   : > { %v1125_v21 = vpop.eup %1124  ;;  %v504_v22 = vadd.f32 1.0, %v1123_v17  ;;  %v963_v23 = vmul.f32 -1.442695, %v447_v15  ;;  %1066 = vmatmul.mubr.msk.f32.vlgmr.msra.gmra.mrb[0].mxu1 %vm555_vm5, %v1119_v11 }
 0x105   : > { %v1127_v24 = vpop.eup %1126  ;;  %v962_v25 = vmul.f32 -1.442695, %v442_v19  ;;  %v507_v28 = vadd.f32 1.0, %v1125_v21 }
 0x106   : > { %v1129_v26 = vpop.eup %1128  ;;  %1144 = vrcp.f32 %v504_v22 }
 0x107   : > { %v1131_v27 = vpop.eup %1130  ;;  %1146 = vrcp.f32 %v505_v18  ;;  %1068 = vmatprep.mubr.msk.f32.mxu1 %vm555_vm5, %v1129_v26 }
 0x108   : > { %v1133_v29 = vpop.eup %1132  ;;  %v506_v30 = vadd.f32 1.0, %v1131_v27  ;;  %1148 = vpow2.f32 %v963_v23  ;;  %1069 = vmatmul.mubr.msk.f32.gmra.mrb[2].mxu1 %vm555_vm5, %v1127_v24 }
 0x109   : > { %v1135_v20 = vpop.eup %1134  ;;  %1150 = vpow2.f32 %v962_v25  ;;  %v509_v33 = vadd.f32 1.0, %v1133_v29 }
 0x10a   : > { %v1137_v31 = vpop.eup %1136  ;;  %1152 = vrcp.f32 %v506_v30 }
 0x10b   : > { %v1139_v32 = vpop.eup %1138  ;;  %1154 = vrcp.f32 %v507_v28  ;;  %1071 = vmatprep.mubr.msk.f32.mxu1 %vm555_vm5, %v1137_v31 }
 0x10c   : > { %v1141_v34 = vpop.eup %1140  ;;  %v508_v35 = vadd.f32 1.0, %v1139_v32  ;;  %1072 = vmatmul.mubr.msk.f32.gmra.mrb[4].mxu1 %vm555_vm5, %v1135_v20 }
 0x10d   : > { %v1143_v36 = vpop.eup %1142  ;;  %v511_v37 = vadd.f32 1.0, %v1141_v34 }
 0x10e   : > { %1156 = vrcp.f32 %v508_v35  ;;  %v510_v38 = vadd.f32 1.0, %v1143_v36 }
 0x10f   : > { %1158 = vrcp.f32 %v509_v33 }
 0x110   : > { %v1145_v39 = vpop.eup %1144  ;;  %1160 = vrcp.f32 %v510_v38 }
 0x111   : > { %v1147_v40 = vpop.eup %1146  ;;  %1074 = vmatprep.mubr.msk.f32.mxu1 %vm555_vm5, %v1145_v39  ;;  %1162 = vrcp.f32 %v511_v37 }
 0x112   : > { %v1149_v41 = vpop.eup %1148  ;;  %1075 = vmatmul.mubr.msk.f32.gmra.mrb[6].mxu1 %vm555_vm5, %v1147_v40 }
 0x113   : > { %v1151_v42 = vpop.eup %1150  ;;  %v513_v43 = vadd.f32 1.0, %v1149_v41 }
 0x114   : > { %v1153_v44 = vpop.eup %1152  ;;  %v512_v45 = vadd.f32 1.0, %v1151_v42 }
 0x115   : > { %v1155_v46 = vpop.eup %1154  ;;  %1077 = vmatprep.mubr.msk.f32.mxu1 %vm555_vm5, %v1153_v44 }
 0x116   : > { %1164 = vrcp.f32 %v512_v45  ;;  %1078 = vmatmul.mubr.msk.f32.gmra.mrb[8].mxu1 %vm555_vm5, %v1155_v46 }
 0x117   : > { %1166 = vrcp.f32 %v513_v43 }
 0x118   : > { %v1157_v47 = vpop.eup %1156 }
 0x119   : > { %v1159_v48 = vpop.eup %1158  ;;  %1080 = vmatprep.mubr.msk.f32.mxu1 %vm555_vm5, %v1157_v47 }
 0x11a   : > { %1081 = vmatmul.mubr.msk.f32.gmra.mrb[10].mxu1 %vm555_vm5, %v1159_v48  ;;  %v1161_v49 = vpop.eup %1160 }
 0x11b   : > { %1083 = vmatprep.mubr.msk.f32.mxu1 %vm555_vm5, %v1161_v49  ;;  %v1163_v50 = vpop.eup %1162 }
 0x11e   : > { %1084 = vmatmul.mubr.msk.f32.gmra.mrb[12].mxu1 %vm555_vm5, %v1163_v50 }
 0x120   : > { %v1165_v51 = vpop.eup %1164 }
 0x121   : > { %v1167_v52 = vpop.eup %1166  ;;  %1086 = vmatprep.mubr.msk.f32.mxu1 %vm555_vm5, %v1165_v51 }
 0x122   : > { %1087 = vmatmul.mubr.msk.f32.gmra.mrb[14].mxu1 %vm555_vm5, %v1167_v52 }
 0x1d7   : > { %v1067_v54 = vpop.f32.mrb[0].mxu1 }
 0x1d8   : > { %v680_v55 = vadd.f32 %v1067_v54, %v1370_v53  ;;  %v674_v56 = vpop.f32.mrb[1].mxu1 }
 0x1d9   : > { %v675_v57 = vadd.f32 %v1370_v53, %v674_v56 }
 0x1da   : > { %v983_v58 = vmul.f32 -1.442695, %v680_v55 }
 0x1db   : > { %v982_v59 = vmul.f32 -1.442695, %v675_v57  ;;  %v1070_v60 = vpop.f32.mrb[2].mxu1 }
 0x1dc   : > { %1168 = vpow2.f32 %v983_v58  ;;  %v690_v61 = vadd.f32 %v1070_v60, %v1370_v53  ;;  %v684_v62 = vpop.f32.mrb[3].mxu1 }
 0x1dd   : > { %1170 = vpow2.f32 %v982_v59  ;;  %v685_v63 = vadd.f32 %v1370_v53, %v684_v62 }
 0x1de   : > { %v985_v0 = vmul.f32 -1.442695, %v690_v61 }
 0x1df   : > { %v984_v1 = vmul.f32 -1.442695, %v685_v63  ;;  %v1073_v2 = vpop.f32.mrb[4].mxu1 }
 0x1e0   : > { %1172 = vpow2.f32 %v985_v0  ;;  %v700_v3 = vadd.f32 %v1073_v2, %v1370_v53  ;;  %v694_v4 = vpop.f32.mrb[5].mxu1 }
 0x1e1   : > { %1174 = vpow2.f32 %v984_v1  ;;  %v695_v5 = vadd.f32 %v1370_v53, %v694_v4 }
 0x1e2   : > { %v987_v6 = vmul.f32 -1.442695, %v700_v3 }
 0x1e3   : > { %v986_v7 = vmul.f32 -1.442695, %v695_v5 }
 0x1e4   : > { %1176 = vpow2.f32 %v987_v6 }
 0x1e5   : > { %1178 = vpow2.f32 %v986_v7  ;;  %v1076_v8 = vpop.f32.mrb[6].mxu1 }
 0x1e6   : > { %v1169_v9 = vpop.eup %1168  ;;  %v710_v10 = vadd.f32 %v1076_v8, %v1370_v53  ;;  %v704_v11 = vpop.f32.mrb[7].mxu1 }
 0x1e7   : > { %v1171_v12 = vpop.eup %1170  ;;  %v802_v13 = vadd.f32 1.0, %v1169_v9  ;;  %v705_v14 = vadd.f32 %v1370_v53, %v704_v11 }
 0x1e8   : > { %v801_v15 = vadd.f32 1.0, %v1171_v12  ;;  %v989_v16 = vmul.f32 -1.442695, %v710_v10 }
 0x1e9   : > { %1180 = vrcp.f32 %v802_v13  ;;  %v988_v17 = vmul.f32 -1.442695, %v705_v14  ;;  %v1079_v18 = vpop.f32.mrb[8].mxu1 }
 0x1ea   : > { %v1173_v19 = vpop.eup %1172  ;;  %1182 = vrcp.f32 %v801_v15  ;;  %v720_v21 = vadd.f32 %v1079_v18, %v1370_v53  ;;  %v714_v22 = vpop.f32.mrb[9].mxu1 }
 0x1eb   : > { %v1175_v23 = vpop.eup %1174  ;;  %v804_v24 = vadd.f32 1.0, %v1173_v19  ;;  %1184 = vpow2.f32 %v989_v16  ;;  %v715_v25 = vadd.f32 %v1370_v53, %v714_v22 }
 0x1ec   : > { %v803_v26 = vadd.f32 1.0, %v1175_v23  ;;  %1186 = vpow2.f32 %v988_v17  ;;  %v991_v27 = vmul.f32 -1.442695, %v720_v21 }
 0x1ed   : > { %1188 = vrcp.f32 %v804_v24  ;;  %v990_v28 = vmul.f32 -1.442695, %v715_v25  ;;  %v1082_v29 = vpop.f32.mrb[10].mxu1 }
 0x1ee   : > { %v1177_v30 = vpop.eup %1176  ;;  %1190 = vrcp.f32 %v803_v26  ;;  %v730_v20 = vadd.f32 %v1082_v29, %v1370_v53  ;;  %v724_v31 = vpop.f32.mrb[11].mxu1 }
 0x1ef   : > { %v1179_v32 = vpop.eup %1178  ;;  %v806_v33 = vadd.f32 1.0, %v1177_v30  ;;  %1192 = vpow2.f32 %v991_v27  ;;  %v725_v34 = vadd.f32 %v1370_v53, %v724_v31 }
 0x1f0   : > { %v805_v35 = vadd.f32 1.0, %v1179_v32  ;;  %1194 = vpow2.f32 %v990_v28  ;;  %v993_v36 = vmul.f32 -1.442695, %v730_v20 }
 0x1f1   : > { %1196 = vrcp.f32 %v806_v33  ;;  %v992_v37 = vmul.f32 -1.442695, %v725_v34  ;;  %v1085_v38 = vpop.f32.mrb[12].mxu1 }
 0x1f2   : > { %1198 = vrcp.f32 %v805_v35  ;;  %v740_v39 = vadd.f32 %v1085_v38, %v1370_v53  ;;  %v734_v40 = vpop.f32.mrb[13].mxu1 }
 0x1f3   : > { %v1181_v41 = vpop.eup %1180  ;;  %1200 = vpow2.f32 %v993_v36  ;;  %v735_v42 = vadd.f32 %v1370_v53, %v734_v40 }
 0x1f4   : > { %v1183_v43 = vpop.eup %1182  ;;  %850 = vst.msk [vmem:[%s1389_s12 + $0x8] sm:$0xff] %vm252_vm1, %v1181_v41  ;;  %1202 = vpow2.f32 %v992_v37  ;;  %v995_v44 = vmul.f32 -1.442695, %v740_v39 }
 0x1f5   : > { %v1185_v45 = vpop.eup %1184  ;;  %849 = vst.msk [vmem:[%s1389_s12] sm:$0xff] %vm252_vm1, %v1183_v43  ;;  %v994_v46 = vmul.f32 -1.442695, %v735_v42  ;;  %v1088_v47 = vpop.f32.mrb[14].mxu1 }
 0x1f6   : > { %v1187_v48 = vpop.eup %1186  ;;  %v808_v49 = vadd.f32 1.0, %v1185_v45  ;;  %1204 = vpow2.f32 %v995_v44  ;;  %v750_v50 = vadd.f32 %v1088_v47, %v1370_v53  ;;  %v744_v51 = vpop.f32.mrb[15].mxu1 }
 0x1f7   : > { %v1189_v52 = vpop.eup %1188  ;;  %v807_v54 = vadd.f32 1.0, %v1187_v48  ;;  %1206 = vpow2.f32 %v994_v46  ;;  %v745_v55 = vadd.f32 %v1370_v53, %v744_v51 }
 0x1f8   : > { %v1191_v56 = vpop.eup %1190  ;;  %852 = vst.msk [vmem:[%s1389_s12 + $0x18] sm:$0xff] %vm252_vm1, %v1189_v52  ;;  %1208 = vrcp.f32 %v808_v49  ;;  %v997_v57 = vmul.f32 -1.442695, %v750_v50 }
 0x1f9   : > { %v1193_v58 = vpop.eup %1192  ;;  %851 = vst.msk [vmem:[%s1389_s12 + $0x10] sm:$0xff] %vm252_vm1, %v1191_v56  ;;  %1210 = vrcp.f32 %v807_v54  ;;  %v996_v59 = vmul.f32 -1.442695, %v745_v55 }
 0x1fa   : > { %v1195_v60 = vpop.eup %1194  ;;  %v810_v61 = vadd.f32 1.0, %v1193_v58  ;;  %1212 = vpow2.f32 %v997_v57 }
 0x1fb   : > { %v1197_v62 = vpop.eup %1196  ;;  %v809_v63 = vadd.f32 1.0, %v1195_v60  ;;  %1214 = vpow2.f32 %v996_v59 }
 0x1fc   : > { %v1199_v0 = vpop.eup %1198  ;;  %854 = vst.msk [vmem:[%s1389_s12 + $0x28] sm:$0xff] %vm252_vm1, %v1197_v62  ;;  %1216 = vrcp.f32 %v810_v61 }
 0x1fd   : > { %v1201_v53 = vpop.eup %1200  ;;  %853 = vst.msk [vmem:[%s1389_s12 + $0x20] sm:$0xff] %vm252_vm1, %v1199_v0  ;;  %1218 = vrcp.f32 %v809_v63 }
 0x1fe   : > { %v1203_v1 = vpop.eup %1202  ;;  %v812_v2 = vadd.f32 1.0, %v1201_v53 }
 0x1ff   : > { %v811_v3 = vadd.f32 1.0, %v1203_v1 }
 0x200   : > { %v1205_v4 = vpop.eup %1204  ;;  %1220 = vrcp.f32 %v812_v2 }
 0x201   : > { %v1207_v5 = vpop.eup %1206  ;;  %1222 = vrcp.f32 %v811_v3  ;;  %v814_v6 = vadd.f32 1.0, %v1205_v4 }
 0x202   : > { %v1209_v7 = vpop.eup %1208  ;;  %v813_v8 = vadd.f32 1.0, %v1207_v5 }
 0x203   : > { %v1211_v9 = vpop.eup %1210  ;;  %856 = vst.msk [vmem:[%s1389_s12 + $0x38] sm:$0xff] %vm252_vm1, %v1209_v7  ;;  %1224 = vrcp.f32 %v814_v6 }
 0x204   : > { %v1213_v10 = vpop.eup %1212  ;;  %855 = vst.msk [vmem:[%s1389_s12 + $0x30] sm:$0xff] %vm252_vm1, %v1211_v9  ;;  %1226 = vrcp.f32 %v813_v8 }
 0x205   : > { %v1215_v11 = vpop.eup %1214  ;;  %v816_v12 = vadd.f32 1.0, %v1213_v10 }
 0x206   : > { %v1217_v13 = vpop.eup %1216  ;;  %v815_v14 = vadd.f32 1.0, %v1215_v11 }
 0x207   : > { %v1219_v15 = vpop.eup %1218  ;;  %858 = vst.msk [vmem:[%s1389_s12 + $0x48] sm:$0xff] %vm252_vm1, %v1217_v13  ;;  %1228 = vrcp.f32 %v816_v12 }
 0x208   : > { %857 = vst.msk [vmem:[%s1389_s12 + $0x40] sm:$0xff] %vm252_vm1, %v1219_v15  ;;  %1230 = vrcp.f32 %v815_v14 }
 0x20a   : > { %v1221_v16 = vpop.eup %1220 }
 0x20b   : > { %v1223_v17 = vpop.eup %1222  ;;  %860 = vst.msk [vmem:[%s1389_s12 + $0x58] sm:$0xff] %vm252_vm1, %v1221_v16 }
 0x20c   : > { %859 = vst.msk [vmem:[%s1389_s12 + $0x50] sm:$0xff] %vm252_vm1, %v1223_v17 }
 0x20d   : > { %v1225_v18 = vpop.eup %1224 }
 0x20e   : > { %v1227_v19 = vpop.eup %1226  ;;  %862 = vst.msk [vmem:[%s1389_s12 + $0x68] sm:$0xff] %vm252_vm1, %v1225_v18 }
 0x20f   : > { %861 = vst.msk [vmem:[%s1389_s12 + $0x60] sm:$0xff] %vm252_vm1, %v1227_v19 }
 0x211   : > { %v1229_v21 = vpop.eup %1228 }
 0x212   : > { %v1231_v22 = vpop.eup %1230  ;;  %864 = vst.msk [vmem:[%s1389_s12 + $0x78] sm:$0xff] %vm252_vm1, %v1229_v21 }
 0x213   : > { %863 = vst.msk [vmem:[%s1389_s12 + $0x70] sm:$0xff] %vm252_vm1, %v1231_v22 }
 0x214 PF: > { %s15_s18 = sadd.s32 1, %s1238_s18  }
 0x215   : > { %p12_p4 = scmp.ge.s32.totalorder %s15_s18, 4  }
 0x217   :  { %14 = sbr.rel (!%p12_p4) target bundleno = 1 (0x1), region = 70 }

</bundles_post_ra>
